<compile_context>
chip_gen: v5e
topology: v5e:2x2
jax: 0.10.0
libtpu: 0.0.40
codegen_flags: <defaults>
</compile_context>

<pallas_src>
import functools

import jax
import jax.numpy as jnp
from jax.experimental import pallas as pl
from jax.experimental.pallas import tpu as pltpu


def _pick_nll_kernel(logits_ref, labels_ref, picks_ref, nll_ref, *, ignore_lb):
    # logits_ref: (C, TP) -- classes on sublanes, pixels on lanes (lane-dense).
    # labels_ref: (1, TP) int32; picks_ref / nll_ref: (1, TP) f32.
    x = logits_ref[...].astype(jnp.float32)            # upcast in-kernel (bf16 ok)
    lab = labels_ref[...]                               # (1, TP)
    invalid = lab == ignore_lb
    lab0 = jnp.where(invalid, 0, lab)                   # torch aliasing: ignored -> class 0

    m = jnp.max(x, axis=0, keepdims=True)               # (1, TP) cross-sublane reduce
    z = x - m
    s = jnp.sum(jnp.exp(z), axis=0, keepdims=True)
    lse = jnp.log(s)                                     # log-sum-exp of shifted logits

    cls = jax.lax.broadcasted_iota(jnp.int32, x.shape, 0)
    picked = jnp.sum(jnp.where(cls == lab0, z, 0.0), axis=0, keepdims=True)

    nll = lse - picked                                   # -log softmax at target class
    # prob = exp(picked - lse) = exp(-nll): EUP exp, no VPU divide.
    picks_ref[...] = jnp.where(invalid, 1.0, jnp.exp(-nll))  # picks[invalid] = 1 (torch)
    nll_ref[...] = nll


def _pick_tile(hw, cap):
    """Largest multiple of 128 that divides hw and is <= cap (None if hw % 128)."""
    if hw % 128 != 0:
        return None
    q = hw // 128
    best = 128
    for d in range(1, q + 1):
        if q % d == 0 and 128 * d <= cap:
            best = 128 * d
    return best


def ohem_ce_loss(logits, labels, *, thresh, n_min, ignore_lb=255, block_pixels=8192):
    """Forward pass of OhemCELoss. logits: (N, C, H, W), labels: (N, H, W) int."""
    N, C, H, W = logits.shape
    HW = H * W
    P = N * HW

    x = logits.reshape(N, C, HW)                         # free reshape, no transpose
    lab = labels.reshape(N, 1, HW).astype(jnp.int32)

    TP = _pick_tile(HW, block_pixels)
    HW_pad = HW
    if TP is None:
        # Rare path: H*W not a multiple of 128 -> pad pixel axis (one HBM copy).
        HW_pad = ((HW + 127) // 128) * 128
        x = jnp.pad(x, ((0, 0), (0, 0), (0, HW_pad - HW)))
        lab = jnp.pad(lab, ((0, 0), (0, 0), (0, HW_pad - HW)),
                      constant_values=ignore_lb)
        TP = _pick_tile(HW_pad, block_pixels)

    picks, nll = pl.pallas_call(
        functools.partial(_pick_nll_kernel, ignore_lb=ignore_lb),
        out_shape=(jax.ShapeDtypeStruct((N, 1, HW_pad), jnp.float32),
                   jax.ShapeDtypeStruct((N, 1, HW_pad), jnp.float32)),
        grid=(N, HW_pad // TP),
        in_specs=[pl.BlockSpec((None, C, TP), lambda n, p: (n, 0, p)),
                  pl.BlockSpec((None, 1, TP), lambda n, p: (n, 0, p))],
        out_specs=(pl.BlockSpec((None, 1, TP), lambda n, p: (n, 0, p)),
                   pl.BlockSpec((None, 1, TP), lambda n, p: (n, 0, p))),
        compiler_params=pltpu.CompilerParams(
            dimension_semantics=("parallel", "parallel")),
    )(x, lab)

    picks_p = picks[:, 0, :HW].reshape(P)
    nll_p = nll[:, 0, :HW].reshape(P)

    # TODO(synk): full O(P log P) sort just to get the n_min-th smallest pick;
    # an O(P) selection (histogram / partial select) would be cheaper for
    # multi-megapixel inputs, but there is no clean Pallas sort equivalent.
    sorteds = jnp.sort(picks_p)
    t = sorteds[n_min]
    thresh_val = jnp.where(t < thresh, jnp.float32(thresh), t)

    # Masked mean in plain JAX: data is only 2*P*4 bytes, so the XLA reduction
    # runs at HBM roofline; this replaces the old serialized reduction kernel,
    # its extra pads, and its 1-lane accumulator stores.
    keep = (picks_p <= thresh_val).astype(jnp.float32)   # labels[picks > thresh] = ignore
    return jnp.sum(nll_p * keep) / jnp.sum(keep)


def _reference_loss(logits, labels, *, thresh, n_min, ignore_lb=255):
    """Pure-JAX replica of the torch forward for a sanity check."""
    N, C, H, W = logits.shape
    P = N * H * W
    x = jnp.transpose(logits, (0, 2, 3, 1)).reshape(P, C).astype(jnp.float32)
    lab = labels.reshape(P).astype(jnp.int32)
    invalid = lab == ignore_lb
    lab0 = jnp.where(invalid, 0, lab)
    logp = jax.nn.log_softmax(x, axis=1)
    nll = -jnp.take_along_axis(logp, lab0[:, None], axis=1)[:, 0]
    picks = jnp.where(invalid, 1.0, jnp.exp(-nll))
    sorteds = jnp.sort(picks)
    t = sorteds[n_min]
    tv = jnp.where(t < thresh, jnp.float32(thresh), t)
    keep = picks <= tv
    return jnp.sum(jnp.where(keep, nll, 0.0)) / jnp.sum(keep.astype(jnp.float32))


if __name__ == "__main__":
    # Module "params" (deterministic, from __init__ signature): thresh, n_min, ignore_lb.
    THRESH = 0.7
    IGNORE_LB = 255
    N, C, H, W = 2, 4, 16, 16
    N_MIN = (N * H * W) // 16

    key = jax.random.PRNGKey(0)
    k_logits, k_labels, k_ign = jax.random.split(key, 3)
    logits = jax.random.normal(k_logits, (N, C, H, W), dtype=jnp.float32)
    labels = jax.random.randint(k_labels, (N, H, W), 0, C, dtype=jnp.int32)
    # Sprinkle some ignore pixels to exercise the ignore path.
    ign_mask = jax.random.bernoulli(k_ign, 0.1, (N, H, W))
    labels = jnp.where(ign_mask, IGNORE_LB, labels)

    loss = ohem_ce_loss(logits, labels, thresh=THRESH, n_min=N_MIN, ignore_lb=IGNORE_LB)
    loss = jax.block_until_ready(loss)

    ref = jax.block_until_ready(
        _reference_loss(logits, labels, thresh=THRESH, n_min=N_MIN, ignore_lb=IGNORE_LB))

    assert jnp.isfinite(loss), f"loss not finite: {loss}"
    assert abs(float(loss) - float(ref)) < 1e-2 * max(1.0, abs(float(ref))), (loss, ref)
    print("KERNEL_OK")
</pallas_src>

<mosaic_0001>
module attributes {stable_mosaic.version = 11 : i64} {
  func.func @_pick_nll_kernel(%arg0: i32, %arg1: i32, %arg2: memref<1x4x256xf32, #tpu.memory_space<vmem>>, %arg3: memref<1x1x256xi32, #tpu.memory_space<vmem>>, %arg4: memref<1x1x256xf32, #tpu.memory_space<vmem>>, %arg5: memref<1x1x256xf32, #tpu.memory_space<vmem>>) attributes {dimension_semantics = [#tpu.dimension_semantics<parallel>, #tpu.dimension_semantics<parallel>], iteration_bounds = array<i64: 2, 1>, scalar_prefetch = 0 : i64, scratch_operands = 0 : i64, tpu.core_type = #tpu.core_type<tc>, window_params = [{transform_indices = @transform_0, window_bounds = array<i64: 1, 4, 256>}, {transform_indices = @transform_1, window_bounds = array<i64: 1, 1, 256>}, {transform_indices = @transform_2, window_bounds = array<i64: 1, 1, 256>}, {transform_indices = @transform_3, window_bounds = array<i64: 1, 1, 256>}]} {
    %c0 = arith.constant 0 : index
    %c0_0 = arith.constant 0 : index
    %c0_1 = arith.constant 0 : index
    %0 = vector.load %arg2[%c0, %c0_0, %c0_1] : memref<1x4x256xf32, #tpu.memory_space<vmem>>, vector<1x4x256xf32>
    %1 = vector.shape_cast %0 : vector<1x4x256xf32> to vector<4x256xf32>
    %c0_2 = arith.constant 0 : index
    %c0_3 = arith.constant 0 : index
    %c0_4 = arith.constant 0 : index
    %2 = vector.load %arg3[%c0_2, %c0_3, %c0_4] : memref<1x1x256xi32, #tpu.memory_space<vmem>>, vector<1x1x256xi32>
    %3 = vector.shape_cast %2 : vector<1x1x256xi32> to vector<1x256xi32>
    %c255_i32 = arith.constant 255 : i32
    %4 = vector.broadcast %c255_i32 : i32 to vector<1x256xi32>
    %5 = arith.cmpi eq, %3, %4 : vector<1x256xi32>
    %c0_i32 = arith.constant 0 : i32
    %6 = vector.broadcast %c0_i32 : i32 to vector<1x256xi32>
    %7 = arith.select %5, %6, %3 : vector<1x256xi1>, vector<1x256xi32>
    %cst = arith.constant dense<0xFF800000> : vector<256xf32>
    %8 = vector.multi_reduction <maximumf>, %1, %cst [0] : vector<4x256xf32> to vector<256xf32>
    %9 = vector.shape_cast %8 : vector<256xf32> to vector<1x256xf32>
    %10 = vector.broadcast %9 : vector<1x256xf32> to vector<4x256xf32>
    %11 = arith.subf %1, %10 : vector<4x256xf32>
    %12 = math.exp %11 : vector<4x256xf32>
    %cst_5 = arith.constant dense<0.000000e+00> : vector<256xf32>
    %13 = vector.multi_reduction <add>, %12, %cst_5 [0] : vector<4x256xf32> to vector<256xf32>
    %14 = vector.shape_cast %13 : vector<256xf32> to vector<1x256xf32>
    %15 = math.log %14 : vector<1x256xf32>
    %16 = tpu.iota {dimensions = array<i32: 0>} : vector<4x256xi32>
    %17 = vector.broadcast %7 : vector<1x256xi32> to vector<4x256xi32>
    %18 = arith.cmpi eq, %16, %17 : vector<4x256xi32>
    %cst_6 = arith.constant 0.000000e+00 : f32
    %19 = vector.broadcast %cst_6 : f32 to vector<4x256xf32>
    %20 = arith.select %18, %11, %19 : vector<4x256xi1>, vector<4x256xf32>
    %cst_7 = arith.constant dense<0.000000e+00> : vector<256xf32>
    %21 = vector.multi_reduction <add>, %20, %cst_7 [0] : vector<4x256xf32> to vector<256xf32>
    %22 = vector.shape_cast %21 : vector<256xf32> to vector<1x256xf32>
    %23 = arith.subf %15, %22 : vector<1x256xf32>
    %cst_8 = arith.constant 0.000000e+00 : f32
    %24 = vector.broadcast %cst_8 : f32 to vector<1x256xf32>
    %25 = arith.subf %24, %23 : vector<1x256xf32>
    %26 = math.exp %25 : vector<1x256xf32>
    %cst_9 = arith.constant 1.000000e+00 : f32
    %27 = vector.broadcast %cst_9 : f32 to vector<1x256xf32>
    %28 = arith.select %5, %27, %26 : vector<1x256xi1>, vector<1x256xf32>
    %c0_10 = arith.constant 0 : index
    %c0_11 = arith.constant 0 : index
    %c0_12 = arith.constant 0 : index
    %29 = vector.load %arg4[%c0_10, %c0_11, %c0_12] : memref<1x1x256xf32, #tpu.memory_space<vmem>>, vector<1x1x256xf32>
    %30 = vector.shape_cast %29 : vector<1x1x256xf32> to vector<1x256xf32>
    %31 = vector.shape_cast %28 : vector<1x256xf32> to vector<1x1x256xf32>
    tpu.vector_store %arg4[%c0_10, %c0_11, %c0_12], %31 {strides = array<i32>} : memref<1x1x256xf32, #tpu.memory_space<vmem>>, vector<1x1x256xf32>,
    %c0_13 = arith.constant 0 : index
    %c0_14 = arith.constant 0 : index
    %c0_15 = arith.constant 0 : index
    %32 = vector.load %arg5[%c0_13, %c0_14, %c0_15] : memref<1x1x256xf32, #tpu.memory_space<vmem>>, vector<1x1x256xf32>
    %33 = vector.shape_cast %32 : vector<1x1x256xf32> to vector<1x256xf32>
    %34 = vector.shape_cast %23 : vector<1x256xf32> to vector<1x1x256xf32>
    tpu.vector_store %arg5[%c0_13, %c0_14, %c0_15], %34 {strides = array<i32>} : memref<1x1x256xf32, #tpu.memory_space<vmem>>, vector<1x1x256xf32>,
    return
  }
  func.func @transform_0(%arg0: i32, %arg1: i32) -> (i32, i32, i32) {
    %c0_i32 = arith.constant 0 : i32
    %c0_i32_0 = arith.constant 0 : i32
    return %arg0, %c0_i32, %arg1 : i32, i32, i32
  }
  func.func @transform_1(%arg0: i32, %arg1: i32) -> (i32, i32, i32) {
    %c0_i32 = arith.constant 0 : i32
    %c0_i32_0 = arith.constant 0 : i32
    return %arg0, %c0_i32, %arg1 : i32, i32, i32
  }
  func.func @transform_2(%arg0: i32, %arg1: i32) -> (i32, i32, i32) {
    %c0_i32 = arith.constant 0 : i32
    %c0_i32_0 = arith.constant 0 : i32
    return %arg0, %c0_i32, %arg1 : i32, i32, i32
  }
  func.func @transform_3(%arg0: i32, %arg1: i32) -> (i32, i32, i32) {
    %c0_i32 = arith.constant 0 : i32
    %c0_i32_0 = arith.constant 0 : i32
    return %arg0, %c0_i32, %arg1 : i32, i32, i32
  }
}

</mosaic_0001>

<bundles_post_ra>
// kernel: tpu_custom_call.1
= control target key start
LH: loop header
LB: loop body
LE: loop exit
PB: predicated region body
PF: predicated region fallthrough
CT: control target
= control target key end

     0   :  { %9 = vsyncpa [#allocation3], 0  ;;  %s1052_s0 = inlined_call_operand.hbm [shape: f32[2,4,256], index: 0, kind: input, shape index: {}]   ;;  %s1053_s1 = inlined_call_operand.hbm [shape: s32[2,1,256], index: 1, kind: input, shape index: {}]   ;;  %s1054_s2 = inlined_call_operand.hbm [shape: f32[2,1,256], index: 2, kind: output, shape index: {0}]   ;;  %s1055_s3 = inlined_call_operand.hbm [shape: f32[2,1,256], index: 3, kind: output, shape index: {1}]  }
   0x1   :  { %11 = vsyncpa [#allocation3 + $0x1], 0 }
   0x2   :  { %12 = vsyncpa [#allocation6], 0 }
   0x3   :  { %14 = vsyncpa [#allocation6 + $0x1], 0 }
   0x4   :  { %15 = vsyncpa [#allocation4], 0 }
   0x5   :  { %17 = vsyncpa [#allocation4 + $0x1], 0 }
   0x6   :  { %18 = vsyncpa [#allocation9], 0 }
   0x7   :  { %20 = vsyncpa [#allocation9 + $0x1], 0  ;;  %s863_s12 = smov 0   ;;  %s865_s13 = smov 0  }
   0x8   :  { %s867_s14 = smov 0   ;;  %s869_s15 = smov 0  }
   0x9   :  { %s871_s16 = smov 0   ;;  %s873_s17 = smov 0  }
   0xa LB: > { %s560_s18 = sadd.s32 4294967295, %s841_s17   ;;  %s561_s19 = sadd.s32 4294967294, %s841_s17   ;;  %s841_s17 = sphi %s873_s17, %s26_s17   ;;  %s837_s16 = sphi %s871_s16, %s1067_s16   ;;  %s833_s15 = sphi %s869_s15, %s1066_s15   ;;  %s829_s14 = sphi %s867_s14, %s1065_s14   ;;  %s825_s13 = sphi %s865_s13, %s1064_s13   ;;  %s821_s12 = sphi %s863_s12, %s1063_s12  }
   0xb   : > { %s38_s20 = sadd.s32 1, %s837_s16  ;;  %s47_s21 = sadd.s32 1, %s829_s14 }
   0xc   : > { %p40_p0 = scmp.ge.s32.totalorder %s38_s20, 2  ;;  %p54_p1 = scmp.ne.s32.totalorder %s829_s14, %s825_s13 }
   0xd   : > { %p55_p2 = scmp.eq.s32.totalorder %s841_s17, 0  ;;  %p60_p3 = scmp.ne.s32.totalorder %s825_s13, %s821_s12 }
   0xe   : > { %s1069_s20 = smov (%p40_p0, %s38_s20), 0  ;;  %p61_p5 = scmp.eq.s32.totalorder %s560_s18, 0 }
   0xf   : > { %p904_p4 = por %p55_p2, %p54_p1  ;;  %s42_s23 = ssub.s32 %s837_s16, %s1069_s20 }
  0x10   : > { %p114_p6 = scmp.eq.s32.totalorder %s560_s18, 1  ;;  %p45_p7 = scmp.eq.s32.totalorder %s42_s23, 0 }
  0x11   : > { %p910_p8 = por %p61_p5, %p60_p3  ;;  %p120_p10 = scmp.eq.s32.totalorder %s561_s19, 1 }
  0x12   : > { %p914_p9 = por %p114_p6, %p54_p1  ;;  %p563_p12 = scmp.ge.s32.totalorder %s841_s17, 2 }
  0x13   : > { %s919_s26 = scalar_select %p45_p7, %s829_s14, %s47_s21  }
  0x14   : > { %p921_p11 = por %p120_p10, %p60_p3  ;;  %p603_p13 = scmp.lt.s32.totalorder %s841_s17, 2 }
  0x15   : > { %s168_s28 = sand.u32 1, %s829_s14   ;;  %s580_s30 = sshll.u32 %s837_s16, 3 }
  0x16   : > { %s564_s29 = sshll.u32 %s168_s28, 3  ;;  %s179_s6 = scalar_lea.hbm %s1052_s0, %s580_s30 }
  0x17   : > { %s172_s7 = scalar_lea.vmem [#allocation2], %s564_s29  ;;  %s181_s9 = sshll.u32 %s179_s6, 4  ;;  %s182_s9 = int_to_ptr.hbm [resolvable:$true] %s181_s9 }
  0x18   : > { %s183_s8 = sshll.u32 %s172_s7, 4  ;;  %p934_p0 = pnand %p603_p13, %p904_p4  ;;  %s184_s8 = int_to_ptr.vmem [resolvable:$true] %s183_s8 }
  0x19   : > { %p569_p1 = scmp.ge.s32.totalorder %s841_s17, 1  ;;  %p209_p2 = scmp.lt.s32.totalorder %s841_s17, 3 }
  0x1a   : > { %s169_s11 = scalar_lea.sflag [#allocation3], %s168_s28  ;;  %s567_s18 = sshll.u32 %s168_s28, 1 }
  0x1b   : > { %592 = dma.hbm_to_vmem [thread:$0]  (!%p934_p0), %s182_s9, 128, %s184_s8, %s169_s11  }
  0x1c   : > { %p210_p3 = pnand %p569_p1, %p209_p2  ;;  %s568_s19 = sshll.u32 %s837_s16, 1 }
  0x1d   : > { %s200_s29 = scalar_lea.hbm %s1053_s1, %s568_s19  ;;  %s194_s30 = scalar_lea.vmem [#allocation5], %s567_s18 }
  0x1e   : > { %s204_s22 = sshll.u32 %s194_s30, 4  ;;  %s202_s4 = sshll.u32 %s200_s29, 4  ;;  %s205_s22 = int_to_ptr.vmem [resolvable:$true] %s204_s22  ;;  %s203_s4 = int_to_ptr.hbm [resolvable:$true] %s202_s4 }
  0x1f   : > { %s191_s5 = scalar_lea.sflag [#allocation6], %s168_s28  ;;  %213 = sbr.rel (%p210_p3) target bundleno = 130 (0x82), region = 28 }
  0x20   : > { %595 = dma.hbm_to_vmem [thread:$0]  (!%p934_p0), %s203_s4, 32, %s205_s22, %s191_s5  }
  0x21   : > { %s949_s6 = sand.u32 (!%p210_p3), 1, %s825_s13  }
  0x22   : > { %s570_s7 = sshll.u32 (!%p210_p3), %s949_s6, 3  ;;  %s216_s8 = scalar_lea.sflag (!%p210_p3), [#allocation3], %s949_s6 }
  0x23   : > { %s219_s9 = scalar_lea.vmem (!%p210_p3), [#allocation2], %s570_s7 }
  0x24   : > { %804 = dma.done.wait (%p910_p8), %s216_s8, 128  }
  0x25   : > { %806 = vsyncadd (%p910_p8), %s216_s8, 4294967168  ;;  %s958_s28 = sshll.u32 %s949_s6, 1  ;;  %s226_s10 = scalar_lea.sflag [#allocation6], %s949_s6 }
  0x26   : > { %s229_s11 = scalar_lea.vmem [#allocation5], %s958_s28 }
  0x27   : > { %808 = dma.done.wait (%p910_p8), %s226_s10, 32  }
  0x28   : > { %810 = vsyncadd (%p910_p8), %s226_s10, 4294967264  ;;  %v267_v0 = vld [vmem:[%s219_s9] sm:$0xff]  ;;  %vm277_vm0 = vcmask 1043456   ;;  %v969_v22 = vld [vmem:[%s229_s11] sm:$0x3]  ;;  %v324_v23 = vlaneseq  ;;  %s576_s24 = sshll.u32 %s833_s15, 1 }
  0x29   : > { %272 = vst [vmem:[#allocation1] ss:$2 sm:$0xff] %v267_v0  ;;  %vm269_vm1 = vcmp.eq.s32.totalorder %v969_v22, 255  ;;  %s412_s21 = scalar_lea.hbm %s1055_s3, %s576_s24  ;;  %s262_s23 = scalar_lea.vmem [#allocation8], %s958_s28  ;;  %vm363_vm4 = vcmask 1040384  }
  0x2a   : > { %v270_v24 = vsel %vm269_vm1, 0, %v969_v22  ;;  %v325_v29 = vshrl.u32 %v324_v23, 7  ;;  %s986_s29 = sshll.u32 %s262_s23, 4  ;;  %s416_s30 = sshll.u32 %s412_s21, 4  ;;  %vm988_vm5 = vcmp.lt.s32.totalorder %v324_v23, 256  ;;  %s415_s29 = int_to_ptr.vmem [resolvable:$true] %s986_s29  ;;  %s417_s30 = int_to_ptr.hbm [resolvable:$true] %s416_s30 }
  0x2b   : > { %v326_v32 = vperm.slane %v270_v24, 0  ;;  %v327_v33 = vperm.slane %v270_v24, 1  ;;  %s384_s22 = scalar_lea.sflag [#allocation9], %s949_s6  ;;  %s737_s4 = sshra.s32 %s417_s30, 4  ;;  %s738_s4 = int_to_ptr.hbm [resolvable:$true] %s737_s4 }
  0x2c   : > { %s739_s5 = scalar_lea.hbm %s738_s4, 2  ;;  %s743_s9 = scalar_lea.hbm %s1055_s3, 4 }
  0x2d   : > { %vm328_vm2 = vcmp.eq.s32.totalorder %v325_v29, %v326_v32  ;;  %vm329_vm3 = vcmp.eq.s32.totalorder %v325_v29, %v327_v33  ;;  %p740_p4 = scmp.ne.s32.totalorder %s738_s4, %s739_s5  ;;  %p744_p7 = scmp.lt.s32.totalorder %s738_s4, %s1055_s3 }
  0x2e   : > { %p745_p8 = scmp.lt.s32.totalorder %s743_s9, %s739_s5 }
  0x2f   : > { %p741_p5 = pnand %p740_p4, %p914_p9 }
  0x30   : > { %v273_v1 = vld.sshfl [vmem:[#allocation1] sm:$0xff pattern:$0x75316420]  ;;  %v274_v2 = vld.sshfl [vmem:[#allocation1 + $0x8] sm:$0xff pattern:$0x75316420]  ;;  %p746_p10 = por %p745_p8, %p744_p7 }
  0x31   : > { %v278_v3 = vsel %vm277_vm0, %v273_v1, -inf  ;;  %v285_v4 = vsel %vm277_vm0, %v274_v2, -inf  ;;  %p742_p6 = pneg %p741_p5 }
  0x32   : > { %v279_v5 = vrot.slane %v278_v3, 4  ;;  %v286_v6 = vrot.slane %v285_v4, 4 }
  0x33   : > { %p747_p13 = pnand %p746_p10, %p742_p6 }
  0x34   : > { %v280_v7 = vmax.f32 %v278_v3, %v279_v5  ;;  %v287_v8 = vmax.f32 %v285_v4, %v286_v6 }
  0x36   : > { %v281_v9 = vrot.slane %v280_v7, 2  ;;  %v288_v10 = vrot.slane %v287_v8, 2 }
  0x38   : > { %v282_v11 = vmax.f32 %v280_v7, %v281_v9  ;;  %v289_v12 = vmax.f32 %v287_v8, %v288_v10 }
  0x3a   : > { %v283_v13 = vrot.slane %v282_v11, 1  ;;  %v290_v14 = vrot.slane %v289_v12, 1 }
  0x3c   : > { %v291_v15 = vmax.f32 %v289_v12, %v290_v14  ;;  %v284_v16 = vmax.f32 %v282_v11, %v283_v13 }
  0x3e   : > { %v294_v17 = vrot.slane %v291_v15, 4 }
  0x40   : > { %v295_v18 = vsel %vm277_vm0, %v284_v16, %v294_v17 }
  0x41   : > { %v297_v19 = vsub.f32 %v267_v0, %v295_v18 }
  0x43   : > { %v298_v20 = vmul.f32 1.442695, %v297_v19 }
  0x45   : > { %653 = vpow2.f32 %v298_v20 }
  0x4b   : > { %v654_v21 = vpop.eup %653 }
  0x4c   : > { %301 = vst [vmem:[#allocation1] ss:$2 sm:$0xff] %v654_v21 }
  0x53   : > { %v302_v25 = vld.sshfl [vmem:[#allocation1] sm:$0xff pattern:$0x75316420]  ;;  %v303_v26 = vld.sshfl [vmem:[#allocation1 + $0x8] sm:$0xff pattern:$0x75316420] }
  0x54   : > { %v306_v27 = vsel %vm277_vm0, %v302_v25, 0.0  ;;  %v313_v28 = vsel %vm277_vm0, %v303_v26, 0.0  ;;  %331 = vst [vmem:[#allocation1] ss:$2 sm:$0xff] %v297_v19 }
  0x55   : > { %v307_v30 = vrot.slane %v306_v27, 4  ;;  %v314_v31 = vrot.slane %v313_v28, 4 }
  0x57   : > { %v308_v34 = vadd.f32 %v307_v30, %v306_v27  ;;  %v315_v35 = vadd.f32 %v314_v31, %v313_v28 }
  0x59   : > { %v309_v36 = vrot.slane %v308_v34, 2  ;;  %v316_v37 = vrot.slane %v315_v35, 2 }
  0x5b   : > { %v317_v38 = vadd.f32 %v316_v37, %v315_v35  ;;  %v310_v39 = vadd.f32 %v309_v36, %v308_v34  ;;  %v332_v40 = vld.sshfl [vmem:[#allocation1] sm:$0xff pattern:$0x75316420]  ;;  %v333_v41 = vld.sshfl [vmem:[#allocation1 + $0x8] sm:$0xff pattern:$0x75316420] }
  0x5c   : > { %v336_v42 = vsel %vm328_vm2, %v332_v40, 0.0  ;;  %v337_v43 = vsel %vm329_vm3, %v333_v41, 0.0 }
  0x5d   : > { %v311_v44 = vrot.slane %v310_v39, 1  ;;  %v318_v45 = vrot.slane %v317_v38, 1  ;;  %v338_v46 = vsel %vm277_vm0, %v336_v42, 0.0  ;;  %v345_v47 = vsel %vm277_vm0, %v337_v43, 0.0 }
  0x5e   : > { %v339_v48 = vrot.slane %v338_v46, 4  ;;  %v346_v49 = vrot.slane %v345_v47, 4 }
  0x5f   : > { %v312_v50 = vadd.f32 %v311_v44, %v310_v39  ;;  %v319_v51 = vadd.f32 %v318_v45, %v317_v38 }
  0x60   : > { %v340_v52 = vadd.f32 %v339_v48, %v338_v46  ;;  %v347_v53 = vadd.f32 %v346_v49, %v345_v47 }
  0x61   : > { %655 = vlog2.f32 %v312_v50 }
  0x62   : > { %657 = vlog2.f32 %v319_v51  ;;  %v341_v54 = vrot.slane %v340_v52, 2  ;;  %v348_v55 = vrot.slane %v347_v53, 2 }
  0x64   : > { %v342_v56 = vadd.f32 %v341_v54, %v340_v52  ;;  %v349_v57 = vadd.f32 %v348_v55, %v347_v53 }
  0x66   : > { %v343_v58 = vrot.slane %v342_v56, 1  ;;  %v350_v59 = vrot.slane %v349_v57, 1 }
  0x67   : > { %v656_v60 = vpop.eup %655 }
  0x68   : > { %v658_v61 = vpop.eup %657  ;;  %v321_v62 = vmul.f32 0.6931472, %v656_v60  ;;  %v344_v63 = vadd.f32 %v343_v58, %v342_v56  ;;  %v351_v0 = vadd.f32 %v350_v59, %v349_v57 }
  0x69   : > { %v323_v1 = vmul.f32 0.6931472, %v658_v61 }
  0x6a   : > { %v352_v2 = vsub.f32 %v321_v62, %v344_v63 }
  0x6b   : > { %v353_v3 = vsub.f32 %v323_v1, %v351_v0 }
  0x6c   : > { %v354_v4 = vsub.f32 0.0, %v352_v2 }
  0x6d   : > { %v374_v6 = vrot.slane %v353_v3, 7  ;;  %v355_v7 = vsub.f32 0.0, %v353_v3 }
  0x6e   : > { %v356_v8 = vmul.f32 1.442695, %v354_v4 }
  0x6f   : > { %v375_v9 = vsel %vm363_vm4, %v352_v2, %v374_v6  ;;  %v358_v10 = vmul.f32 1.442695, %v355_v7 }
  0x70   : > { %377 = vst.msk [vmem:[%s262_s23] sm:$0x3] %vm988_vm5, %v375_v9 }
  0x71   : > { %659 = vpow2.f32 %v358_v10 }
  0x72   : > { %750 = shalt.err (!%p747_p13)
}
  0x73   : > { %586 = dma.vmem_to_hbm [thread:$0]  (%p914_p9), %s415_s29, 32, %s417_s30, %s384_s22   ;;  %661 = vpow2.f32 %v356_v8 }
  0x74   : > { %s396_s21 = scalar_lea.hbm %s1054_s2, %s576_s24  ;;  %s255_s23 = scalar_lea.vmem [#allocation7], %s958_s28 }
  0x75   : > { %s398_s7 = sshll.u32 %s255_s23, 4  ;;  %s400_s4 = sshll.u32 %s396_s21, 4  ;;  %s399_s7 = int_to_ptr.vmem [resolvable:$true] %s398_s7  ;;  %s401_s4 = int_to_ptr.hbm [resolvable:$true] %s400_s4 }
  0x76   : > { %s379_s15 = scalar_lea.sflag [#allocation4], %s949_s6  ;;  %s765_s29 = sshra.s32 %s401_s4, 4  ;;  %s766_s29 = int_to_ptr.hbm [resolvable:$true] %s765_s29 }
  0x77   : > { %v660_v11 = vpop.eup %659  ;;  %s767_s28 = scalar_lea.hbm %s766_s29, 2  ;;  %s771_s22 = scalar_lea.hbm %s1054_s2, 4 }
  0x78   : > { %v362_v12 = vrot.slane %v660_v11, 7  ;;  %p768_p0 = scmp.ne.s32.totalorder %s766_s29, %s767_s28  ;;  %p772_p3 = scmp.lt.s32.totalorder %s766_s29, %s1054_s2 }
  0x79   : > { %v662_v13 = vpop.eup %661  ;;  %p773_p4 = scmp.lt.s32.totalorder %s771_s22, %s767_s28 }
  0x7a   : > { %v364_v14 = vsel %vm363_vm4, %v662_v13, %v362_v12  ;;  %p769_p1 = pnand %p768_p0, %p914_p9 }
  0x7b   : > { %v366_v15 = vsel %vm269_vm1, 1.0, %v364_v14  ;;  %p774_p5 = por %p773_p4, %p772_p3 }
  0x7c   : > { %371 = vst.msk [vmem:[%s255_s23] sm:$0x3] %vm988_vm5, %v366_v15  ;;  %p770_p2 = pneg %p769_p1 }
  0x7e   : > { %p775_p6 = pnand %p774_p5, %p770_p2 }
  0x80   : > { %778 = shalt.err (!%p775_p6)
}
  0x81   : > { %585 = dma.vmem_to_hbm [thread:$0]  (%p914_p9), %s399_s7, 32, %s401_s4, %s379_s15  }
  0x82 PF: > { %s428_s6 = sand.u32 1, %s821_s12   ;;  %p597_p7 = pnand %p563_p12, %p921_p11 }
  0x83   : > { %s429_s9 = scalar_lea.sflag [#allocation4], %s428_s6 }
  0x84   : > { %p598_p8 = pneg %p597_p7 }
  0x86   : > { %812 = dma.done.wait (%p598_p8), %s429_s9, 32  }
  0x87   : > { %814 = vsyncadd (%p598_p8), %s429_s9, 4294967264  ;;  %s439_s10 = scalar_lea.sflag [#allocation9], %s428_s6 }
  0x88   : > { %816 = dma.done.wait (%p598_p8), %s439_s10, 32  }
  0x89   : > { %818 = vsyncadd (%p598_p8), %s439_s10, 4294967264  ;;  %s26_s17 = sadd.s32 1, %s841_s17   ;;  %s1063_s12 = smov %s825_s13 }
  0x8a   : > { %p23_p10 = scmp.ge.s32.totalorder %s26_s17, 4   ;;  %s1064_s13 = smov %s829_s14 }
  0x8b   : > { %s1065_s14 = smov %s919_s26  ;;  %s1066_s15 = smov %s837_s16 }
  0x8c   : > { %s1067_s16 = smov %s1069_s20  ;;  %25 = sbr.rel (!%p23_p10) target bundleno = 10 (0xa), region = 103 }
  0x91   :  { %445 = vsyncpa [#allocation3], 1 }
  0x92   :  { %447 = vsyncpa [#allocation3 + $0x1], 1 }
  0x93   :  { %448 = vsyncpa [#allocation6], 1 }
  0x94   :  { %450 = vsyncpa [#allocation6 + $0x1], 1 }
  0x95   :  { %451 = vsyncpa [#allocation4], 1 }
  0x96   :  { %453 = vsyncpa [#allocation4 + $0x1], 1 }
  0x97   :  { %454 = vsyncpa [#allocation9], 1 }
  0x98   :  { %456 = vsyncpa [#allocation9 + $0x1], 1 }

</bundles_post_ra>
